<compile_context>
chip_gen: v5e
topology: v5e:2x2
jax: 0.10.0
libtpu: 0.0.40
codegen_flags: <defaults>
</compile_context>

<pallas_src>
import numpy as np
import jax
import jax.numpy as jnp
from jax.experimental import pallas as pl
from jax.experimental.pallas import tpu as pltpu


def _round_up(x, m):
    return ((x + m - 1) // m) * m


# ---------------------------------------------------------------------------
# Pallas kernel: row-tiled matmul against a VMEM-resident pooling matrix.
# ---------------------------------------------------------------------------
def _pool_matmul_kernel(x_ref, m_ref, o_ref):
    # x_ref: (tm, K)   m_ref: (K, N)   o_ref: (tm, N)
    o_ref[...] = jnp.dot(
        x_ref[...], m_ref[...], preferred_element_type=jnp.float32
    ).astype(o_ref.dtype)


def _vmem_limit_bytes():
    """~75% of this generation's per-core VMEM (64 MiB v7x, 128 MiB v5e/v6e)."""
    cap = 64 << 20  # safe fallback: v7x per-TensorCore physical VMEM
    try:
        info = pltpu.get_tpu_info()
        cap = int(getattr(info, "vmem_capacity_bytes", cap)) or cap
    except Exception:
        pass
    return int(max(cap * 3 // 4, 16 << 20))


def _choose_row_tile(BC, K, N, vmem_limit, target_tile_bytes=4 << 20, tm_cap=8192):
    """Row tile: big enough to amortize the ~0.35us per-grid-step overhead,
    small enough that double-buffered x/out tiles plus the (double-buffered)
    resident pooling matrix fit the VMEM budget, and >=2 grid steps when rows
    allow so both v7x TensorCores get work."""
    rows8 = _round_up(BC, 8)
    tm = max(target_tile_bytes // (4 * max(K, 1)), 8)
    # VMEM fit: 2 buffers each of x tile and out tile + 2 buffers of M + headroom.
    avail = (vmem_limit * 4) // 5 - 8 * K * N - (1 << 20)
    per_row = 8 * (K + N)  # f32, two buffers of (x row + out row)
    if avail > 0:
        tm = min(tm, max(avail // per_row, 8))
    tm = min(tm, tm_cap, rows8)
    if rows8 >= 16:  # keep >= 2 grid steps (v7x megacore) when possible
        tm = min(tm, _round_up(pl.cdiv(BC, 2), 8))
    tm = max((tm // 8) * 8, 8)
    if tm >= BC:
        tm = BC  # single block spanning all rows (full-dim block is allowed)
    return int(tm)


def pallas_pool_matmul(x_flat, pool_mat):
    """out = x_flat @ pool_mat as a Pallas TPU kernel.

    x_flat:   (BC, K) float32
    pool_mat: (K, N)  float32, kept VMEM-resident via a constant index_map.
    Returns (BC, N).  Rows are tiled along a "parallel" grid axis; a ragged
    last block (BC % tm != 0) is handled by Pallas masking -- no jnp.pad and
    therefore no extra HBM pass.
    """
    BC, K = x_flat.shape
    K2, N = pool_mat.shape
    assert K == K2
    pool_mat = pool_mat.astype(x_flat.dtype)

    vmem_limit = _vmem_limit_bytes()
    tm = _choose_row_tile(BC, K, N, vmem_limit)
    grid = (pl.cdiv(BC, tm),)

    cost = pl.CostEstimate(
        flops=int(2 * BC * K * N),
        transcendentals=0,
        bytes_accessed=int(4 * (BC * K + K * N + BC * N)),
    )

    return pl.pallas_call(
        _pool_matmul_kernel,
        out_shape=jax.ShapeDtypeStruct((BC, N), x_flat.dtype),
        grid=grid,
        in_specs=[
            pl.BlockSpec((tm, K), lambda i: (i, 0)),   # rows tiled / pipelined
            pl.BlockSpec((K, N), lambda i: (0, 0)),    # pooling matrix resident
        ],
        out_specs=pl.BlockSpec((tm, N), lambda i: (i, 0)),
        compiler_params=pltpu.CompilerParams(
            dimension_semantics=("parallel",),          # shard rows across TCs (v7x)
            vmem_limit_bytes=vmem_limit,
        ),
        cost_estimate=cost,
    )(x_flat, pool_mat)


# ---------------------------------------------------------------------------
# Deterministic pooling-matrix construction (host-side glue, torch semantics).
# ---------------------------------------------------------------------------
def adaptive_avg_pool_matrix(H, W, s):
    """(H*W, s*s) matrix implementing F.adaptive_avg_pool2d(x, s) then
    row-major flatten (exact PyTorch window formula)."""
    M = np.zeros((H * W, s * s), dtype=np.float32)
    for oh in range(s):
        h0 = (oh * H) // s
        h1 = -((-(oh + 1) * H) // s)  # ceil((oh+1)*H/s)
        for ow in range(s):
            w0 = (ow * W) // s
            w1 = -((-(ow + 1) * W) // s)
            cnt = (h1 - h0) * (w1 - w0)
            for h in range(h0, h1):
                for w in range(w0, w1):
                    M[h * W + w, oh * s + ow] = 1.0 / cnt
    return M


def grid_patch_matrix(H, W, patch_list, patch_ratio):
    """(H*W, P) matrix implementing grid_transform's per-patch mean pools,
    patches ordered exactly as the torch loops (grid_size, i, j).

    Note: like the torch reference, stride comes from W while the row clamp
    uses H (asymmetric if H != W) -- preserved deliberately to match the spec."""
    cols = []
    for g in patch_list:
        stride = W // g
        ps = int(stride * patch_ratio)
        for i in range(g):
            for j in range(g):
                sx = min(stride * i, H - ps)
                sy = min(stride * j, W - ps)
                col = np.zeros((H * W,), dtype=np.float32)
                cnt = float(ps * ps)
                for h in range(sx, sx + ps):
                    for w in range(sy, sy + ps):
                        col[h * W + w] = 1.0 / cnt
                cols.append(col)
    return np.stack(cols, axis=1)


# ---------------------------------------------------------------------------
# FeatureExtractor in JAX + Pallas
# ---------------------------------------------------------------------------
class FeatureExtractor:
    # If the fused [pools | I] matrix would exceed this, fall back to the
    # pool-only matmul + wrapper concat (keeps very large H*W inputs viable).
    _FUSED_MAT_BYTES_MAX = 8 << 20

    def __init__(self, patch_ratio=2.0, feature_mode="fcn",
                 feature_pyramid=None, patch_list="2,3", num_patch=25,
                 fuse_fcn_identity=True):
        self.feature_mode = feature_mode
        self.patch_ratio = patch_ratio
        self.feature_pyramid = (
            [int(s) for s in feature_pyramid.split(",")] if feature_pyramid else None
        )
        self.patch_list = [int(s) for s in patch_list.split(",")]
        self.num_patch = num_patch
        self.fuse_fcn_identity = fuse_fcn_identity
        # Pooling matrices are deterministic functions of (H, W); cache the
        # device arrays so they are built/uploaded once, not per call.
        self._fcn_cache = {}
        self._grid_cache = {}

    def __call__(self, x, key=None):
        if self.feature_mode == "fcn":
            return self.feature_pyramid_transform(x)
        elif self.feature_mode == "grid":
            return self.grid_transform(x)
        return self.sampling_transform(x, key=key)

    # -- fcn ---------------------------------------------------------------
    def _fcn_matrices(self, H, W):
        ck = (H, W)
        if ck not in self._fcn_cache:
            M_pool = np.concatenate(
                [adaptive_avg_pool_matrix(H, W, s) for s in self.feature_pyramid],
                axis=1)
            n_pool = M_pool.shape[1]
            HW = H * W
            fused = (self.fuse_fcn_identity
                     and 4 * HW * (n_pool + HW) <= self._FUSED_MAT_BYTES_MAX)
            if fused:
                # Combined matrix [pools | I]: one matmul writes the final
                # output tensor (pooled columns then x itself), fully fused.
                M = np.concatenate([M_pool, np.eye(HW, dtype=np.float32)], axis=1)
            else:
                M = M_pool
            self._fcn_cache[ck] = (jnp.asarray(M), n_pool, fused)
        return self._fcn_cache[ck]

    def feature_pyramid_transform(self, x):
        B, C, H, W = x.shape
        M, n_pool, fused = self._fcn_matrices(H, W)
        x_flat = x.reshape(B * C, H * W)
        if fused:
            out = pallas_pool_matmul(x_flat, M)          # (BC, n_pool + HW)
        else:
            pooled = pallas_pool_matmul(x_flat, M)       # (BC, n_pool)
            out = jnp.concatenate([pooled, x_flat], axis=-1)
        return out.reshape(B, C, 1, n_pool + H * W)

    # -- grid --------------------------------------------------------------
    def _grid_matrix(self, H, W):
        ck = (H, W)
        if ck not in self._grid_cache:
            G = grid_patch_matrix(H, W, self.patch_list, self.patch_ratio)
            self._grid_cache[ck] = (jnp.asarray(G), G.shape[1])
        return self._grid_cache[ck]

    def grid_transform(self, x):
        B, C, H, W = x.shape
        G, P = self._grid_matrix(H, W)
        x_flat = x.reshape(B * C, H * W)
        out = pallas_pool_matmul(x_flat, G)   # (BC, P) -- unpadded output cols
        out = out.reshape(B, C, P)            # squeeze(-2) equivalent
        return jnp.transpose(out, (0, 2, 1))  # permute(0, 2, 1) -> (B, P, C)

    # -- sampling ----------------------------------------------------------
    def sampling_transform(self, x, key=None):
        # TODO(synk): random per-batch gather of num_patch positions is a
        # data-dependent gather with no clean static-BlockSpec Pallas path;
        # implemented in plain JAX.  Matches torch semantics: randint high
        # (H-1 / W-1) is exclusive in both frameworks.
        B, C, H, W = x.shape
        if key is None:
            key = jax.random.PRNGKey(0)
        kh, kw = jax.random.split(key)
        pos_h = jax.random.randint(kh, (B, self.num_patch), 0, H - 1)
        pos_w = jax.random.randint(kw, (B, self.num_patch), 0, W - 1)
        flat_idx = pos_h * W + pos_w                      # (B, num_patch)
        x_flat = x.reshape(B, C, H * W)
        gathered = jnp.take_along_axis(
            x_flat, flat_idx[:, None, :], axis=-1)        # (B, C, num_patch)
        return jnp.transpose(gathered, (0, 2, 1))         # (B, num_patch, C)


if __name__ == "__main__":
    key = jax.random.PRNGKey(0)
    B, C, H, W = 2, 4, 16, 16
    x = jax.random.normal(key, (B, C, H, W), dtype=jnp.float32)
    x_np = np.asarray(x).astype(np.float64)
    x_flat_np = x_np.reshape(B * C, H * W)

    # ---- fcn mode (requires a feature_pyramid, as in the DeepEMD config) ----
    fcn_extractor = FeatureExtractor(feature_mode="fcn", feature_pyramid="2,3")
    out_fcn = fcn_extractor(x)
    jax.block_until_ready(out_fcn)
    n_pool = 2 * 2 + 3 * 3
    assert out_fcn.shape == (B, C, 1, n_pool + H * W)

    # reference in float64 on host: pooled columns + identity tail
    M_pool_np = np.concatenate(
        [adaptive_avg_pool_matrix(H, W, 2), adaptive_avg_pool_matrix(H, W, 3)],
        axis=1).astype(np.float64)
    ref_fcn = np.concatenate(
        [x_flat_np @ M_pool_np, x_flat_np], axis=-1).reshape(B, C, 1, -1)
    assert np.allclose(np.asarray(out_fcn), ref_fcn, atol=1e-4, rtol=1e-4)

    # independent semantic check: the s=2 adaptive pool is a uniform 8x8 mean
    pool2_ref = x_np.reshape(B, C, 2, 8, 2, 8).mean(axis=(3, 5)).reshape(B, C, 1, 4)
    assert np.allclose(np.asarray(out_fcn[..., :4]), pool2_ref, atol=1e-4, rtol=1e-4)
    # identity tail must match x.view(B, C, 1, -1) (to MXU multi-pass f32 precision)
    assert np.allclose(np.asarray(out_fcn[..., n_pool:]),
                       x_np.reshape(B, C, 1, H * W), atol=1e-4, rtol=1e-4)

    # ---- grid mode (default patch_list='2,3', patch_ratio=2.0 -> 13 patches) ----
    grid_extractor = FeatureExtractor(feature_mode="grid")
    out_grid = grid_extractor(x)
    jax.block_until_ready(out_grid)
    assert out_grid.shape == (B, 13, C)

    G_np = grid_patch_matrix(H, W, [2, 3], 2.0).astype(np.float64)
    ref_grid = np.transpose((x_flat_np @ G_np).reshape(B, C, -1), (0, 2, 1))
    assert np.allclose(np.asarray(out_grid), ref_grid, atol=1e-4, rtol=1e-4)

    # ---- sampling mode (plain JAX gather; shape check) ----
    samp_extractor = FeatureExtractor(feature_mode="sampling", num_patch=25)
    out_samp = samp_extractor(x, key=jax.random.PRNGKey(0))
    jax.block_until_ready(out_samp)
    assert out_samp.shape == (B, 25, C)

    print("KERNEL_OK")
</pallas_src>

<mosaic_0001>
module attributes {stable_mosaic.version = 11 : i64} {
  func.func @_pool_matmul_kernel(%arg0: i32, %arg1: memref<8x256xf32, #tpu.memory_space<vmem>>, %arg2: memref<256x269xf32, #tpu.memory_space<vmem>>, %arg3: memref<8x269xf32, #tpu.memory_space<vmem>>) attributes {dimension_semantics = [#tpu.dimension_semantics<parallel>], iteration_bounds = array<i64: 1>, scalar_prefetch = 0 : i64, scratch_operands = 0 : i64, tpu.core_type = #tpu.core_type<tc>, window_params = [{transform_indices = @transform_0, window_bounds = array<i64: 8, 256>}, {pipeline_mode = #tpu.pipeline_mode<synchronous>, transform_indices = @transform_1, window_bounds = array<i64: 256, 269>}, {transform_indices = @transform_2, window_bounds = array<i64: 8, 269>}]} {
    %c0 = arith.constant 0 : index
    %c0_0 = arith.constant 0 : index
    %0 = vector.load %arg1[%c0, %c0_0] : memref<8x256xf32, #tpu.memory_space<vmem>>, vector<8x256xf32>
    %c0_1 = arith.constant 0 : index
    %c0_2 = arith.constant 0 : index
    %1 = vector.load %arg2[%c0_1, %c0_2] : memref<256x269xf32, #tpu.memory_space<vmem>>, vector<256x269xf32>
    %cst = arith.constant dense<0.000000e+00> : vector<8x269xf32>
    %2 = tpu.matmul %0, %1, %cst {dimension_numbers = #tpu.dot_dimension_numbers<[1], [0], [0], [1], [0, 0, 1, 1], [], []>} : vector<8x256xf32>, vector<256x269xf32>, vector<8x269xf32> -> vector<8x269xf32>
    %c0_3 = arith.constant 0 : index
    %c0_4 = arith.constant 0 : index
    %3 = vector.load %arg3[%c0_3, %c0_4] : memref<8x269xf32, #tpu.memory_space<vmem>>, vector<8x269xf32>
    tpu.vector_store %arg3[%c0_3, %c0_4], %2 {strides = array<i32>} : memref<8x269xf32, #tpu.memory_space<vmem>>, vector<8x269xf32>,
    return
  }
  func.func @transform_0(%arg0: i32) -> (i32, i32) {
    %c0_i32 = arith.constant 0 : i32
    %c0_i32_0 = arith.constant 0 : i32
    return %arg0, %c0_i32 : i32, i32
  }
  func.func @transform_1(%arg0: i32) -> (i32, i32) {
    %c0_i32 = arith.constant 0 : i32
    %c0_i32_0 = arith.constant 0 : i32
    %c0_i32_1 = arith.constant 0 : i32
    return %c0_i32, %c0_i32_0 : i32, i32
  }
  func.func @transform_2(%arg0: i32) -> (i32, i32) {
    %c0_i32 = arith.constant 0 : i32
    %c0_i32_0 = arith.constant 0 : i32
    return %arg0, %c0_i32 : i32, i32
  }
}

</mosaic_0001>

<bundles_post_ra>
// kernel: tpu_custom_call.1
= control target key start
LH: loop header
LB: loop body
LE: loop exit
PB: predicated region body
PF: predicated region fallthrough
CT: control target
= control target key end

     0   :  { %s590_s0 = inlined_call_operand.vmem [shape: f32[8,256], index: 0, kind: input, shape index: {}]   ;;  %s591_s1 = inlined_call_operand.vmem [shape: f32[256,269], index: 1, kind: input, shape index: {}]   ;;  %s592_s2 = inlined_call_operand.hbm [shape: f32[8,269], index: 2, kind: output, shape index: {}]  }
   0x1   :  { %v59_v0 = vld [vmem:[%s591_s1 + $0x168] sm:$0xff]  ;;  %v56_v2 = vld [vmem:[%s591_s1 + $0x150] sm:$0xff]  ;;  %v53_v4 = vld [vmem:[%s591_s1 + $0x138] sm:$0xff] }
   0x2   :  { %v107_v1 = vld [vmem:[%s591_s1 + $0x2e8] sm:$0xff]  ;;  %110 = vmatpush.msra.mxu0 %v59_v0  ;;  %v104_v3 = vld [vmem:[%s591_s1 + $0x2d0] sm:$0xff]  ;;  %v101_v5 = vld [vmem:[%s591_s1 + $0x2b8] sm:$0xff] }
   0x3   :  { %130 = vmatpush.msra.mxu1 %v107_v1  ;;  %v50_v6 = vld [vmem:[%s591_s1 + $0x120] sm:$0xff]  ;;  %v47_v8 = vld [vmem:[%s591_s1 + $0x108] sm:$0xff]  ;;  %v44_v10 = vld [vmem:[%s591_s1 + $0xf0] sm:$0xff] }
   0x4   :  { %111 = vmatpush.msra.mxu0 %v56_v2  ;;  %v98_v7 = vld [vmem:[%s591_s1 + $0x2a0] sm:$0xff]  ;;  %v95_v9 = vld [vmem:[%s591_s1 + $0x288] sm:$0xff]  ;;  %v92_v11 = vld [vmem:[%s591_s1 + $0x270] sm:$0xff] }
   0x5   :  { %131 = vmatpush.msra.mxu1 %v104_v3  ;;  %v60_v12 = vld [vmem:[%s591_s1 + $0x170] sm:$0xff]  ;;  %v41_v13 = vld [vmem:[%s591_s1 + $0xd8] sm:$0xff]  ;;  %v54_v18 = vld [vmem:[%s591_s1 + $0x140] sm:$0xff] }
   0x6   :  { %112 = vmatpush.msra.mxu0 %v53_v4  ;;  %v108_v14 = vld [vmem:[%s591_s1 + $0x2f0] sm:$0xff]  ;;  %v89_v15 = vld [vmem:[%s591_s1 + $0x258] sm:$0xff]  ;;  %150 = vmatpush.msra.mxu2 %v60_v12  ;;  %v102_v19 = vld [vmem:[%s591_s1 + $0x2c0] sm:$0xff] }
   0x7   :  { %132 = vmatpush.msra.mxu1 %v101_v5  ;;  %170 = vmatpush.msra.mxu3 %v108_v14  ;;  %v57_v16 = vld [vmem:[%s591_s1 + $0x158] sm:$0xff]  ;;  %v38_v20 = vld [vmem:[%s591_s1 + $0xc0] sm:$0xff]  ;;  %v51_v22 = vld [vmem:[%s591_s1 + $0x128] sm:$0xff] }
   0x8   :  { %113 = vmatpush.msra.mxu0 %v50_v6  ;;  %v105_v17 = vld [vmem:[%s591_s1 + $0x2d8] sm:$0xff]  ;;  %v86_v21 = vld [vmem:[%s591_s1 + $0x240] sm:$0xff]  ;;  %151 = vmatpush.msra.mxu2 %v57_v16  ;;  %v99_v23 = vld [vmem:[%s591_s1 + $0x2a8] sm:$0xff] }
   0x9   :  { %133 = vmatpush.msra.mxu1 %v98_v7  ;;  %171 = vmatpush.msra.mxu3 %v105_v17  ;;  %v35_v24 = vld [vmem:[%s591_s1 + $0xa8] sm:$0xff]  ;;  %v48_v26 = vld [vmem:[%s591_s1 + $0x110] sm:$0xff]  ;;  %v45_v30 = vld [vmem:[%s591_s1 + $0xf8] sm:$0xff] }
   0xa   :  { %114 = vmatpush.msra.mxu0 %v47_v8  ;;  %v83_v25 = vld [vmem:[%s591_s1 + $0x228] sm:$0xff]  ;;  %152 = vmatpush.msra.mxu2 %v54_v18  ;;  %v96_v27 = vld [vmem:[%s591_s1 + $0x290] sm:$0xff]  ;;  %v93_v31 = vld [vmem:[%s591_s1 + $0x278] sm:$0xff] }
   0xb   :  { %134 = vmatpush.msra.mxu1 %v95_v9  ;;  %172 = vmatpush.msra.mxu3 %v102_v19  ;;  %v32_v28 = vld [vmem:[%s591_s1 + $0x90] sm:$0xff]  ;;  %v29_v32 = vld [vmem:[%s591_s1 + $0x78] sm:$0xff]  ;;  %v42_v34 = vld [vmem:[%s591_s1 + $0xe0] sm:$0xff] }
   0xc   :  { %115 = vmatpush.msra.mxu0 %v44_v10  ;;  %v80_v29 = vld [vmem:[%s591_s1 + $0x210] sm:$0xff]  ;;  %153 = vmatpush.msra.mxu2 %v51_v22  ;;  %v77_v33 = vld [vmem:[%s591_s1 + $0x1f8] sm:$0xff]  ;;  %v90_v35 = vld [vmem:[%s591_s1 + $0x260] sm:$0xff] }
   0xd   :  { %135 = vmatpush.msra.mxu1 %v92_v11  ;;  %173 = vmatpush.msra.mxu3 %v99_v23  ;;  %v26_v36 = vld [vmem:[%s591_s1 + $0x60] sm:$0xff]  ;;  %v39_v38 = vld [vmem:[%s591_s1 + $0xc8] sm:$0xff]  ;;  %v36_v42 = vld [vmem:[%s591_s1 + $0xb0] sm:$0xff] }
   0xe   :  { %116 = vmatpush.msra.mxu0 %v41_v13  ;;  %154 = vmatpush.msra.mxu2 %v48_v26  ;;  %v74_v37 = vld [vmem:[%s591_s1 + $0x1e0] sm:$0xff]  ;;  %v87_v39 = vld [vmem:[%s591_s1 + $0x248] sm:$0xff]  ;;  %v84_v43 = vld [vmem:[%s591_s1 + $0x230] sm:$0xff] }
   0xf   :  { %136 = vmatpush.msra.mxu1 %v89_v15  ;;  %174 = vmatpush.msra.mxu3 %v96_v27  ;;  %v23_v40 = vld [vmem:[%s591_s1 + $0x48] sm:$0xff]  ;;  %v20_v44 = vld [vmem:[%s591_s1 + $0x30] sm:$0xff]  ;;  %v33_v46 = vld [vmem:[%s591_s1 + $0x98] sm:$0xff] }
  0x10   :  { %117 = vmatpush.msra.mxu0 %v38_v20  ;;  %155 = vmatpush.msra.mxu2 %v45_v30  ;;  %v71_v41 = vld [vmem:[%s591_s1 + $0x1c8] sm:$0xff]  ;;  %v68_v45 = vld [vmem:[%s591_s1 + $0x1b0] sm:$0xff]  ;;  %v81_v47 = vld [vmem:[%s591_s1 + $0x218] sm:$0xff] }
  0x11   :  { %137 = vmatpush.msra.mxu1 %v86_v21  ;;  %175 = vmatpush.msra.mxu3 %v93_v31  ;;  %v17_v48 = vld [vmem:[%s591_s1 + $0x18] sm:$0xff]  ;;  %v30_v50 = vld [vmem:[%s591_s1 + $0x80] sm:$0xff]  ;;  %v27_v56 = vld [vmem:[%s591_s1 + $0x68] sm:$0xff] }
  0x12   :  { %118 = vmatpush.msra.mxu0 %v35_v24  ;;  %156 = vmatpush.msra.mxu2 %v42_v34  ;;  %v65_v49 = vld [vmem:[%s591_s1 + $0x198] sm:$0xff]  ;;  %v78_v51 = vld [vmem:[%s591_s1 + $0x200] sm:$0xff]  ;;  %v75_v57 = vld [vmem:[%s591_s1 + $0x1e8] sm:$0xff] }
  0x13   :  { %138 = vmatpush.msra.mxu1 %v83_v25  ;;  %176 = vmatpush.msra.mxu3 %v90_v35  ;;  %v14_v52 = vld [vmem:[%s591_s1] sm:$0xff]  ;;  %v61_v54 = vld [vmem:[%s591_s1 + $0x178] sm:$0xff]  ;;  %v24_v60 = vld [vmem:[%s591_s1 + $0x50] sm:$0xff] }
  0x14   :  { %119 = vmatpush.msra.mxu0 %v32_v28  ;;  %157 = vmatpush.msra.mxu2 %v39_v38  ;;  %v62_v53 = vld [vmem:[%s591_s1 + $0x180] sm:$0xff]  ;;  %v109_v55 = vld [vmem:[%s591_s1 + $0x2f8] sm:$0xff]  ;;  %v72_v61 = vld [vmem:[%s591_s1 + $0x1d0] sm:$0xff] }
  0x15   :  { %139 = vmatpush.msra.mxu1 %v80_v29  ;;  %177 = vmatpush.msra.mxu3 %v87_v39  ;;  %v58_v58 = vld [vmem:[%s591_s1 + $0x160] sm:$0xff] }
  0x16   :  { %120 = vmatpush.msra.mxu0 %v29_v32  ;;  %158 = vmatpush.msra.mxu2 %v36_v42  ;;  %v106_v59 = vld [vmem:[%s591_s1 + $0x2e0] sm:$0xff] }
  0x17   :  { %140 = vmatpush.msra.mxu1 %v77_v33  ;;  %178 = vmatpush.msra.mxu3 %v84_v43 }
  0x18   :  { %121 = vmatpush.msra.mxu0 %v26_v36  ;;  %159 = vmatpush.msra.mxu2 %v33_v46 }
  0x19   :  { %141 = vmatpush.msra.mxu1 %v74_v37  ;;  %179 = vmatpush.msra.mxu3 %v81_v47 }
  0x1a   :  { %122 = vmatpush.msra.mxu0 %v23_v40  ;;  %160 = vmatpush.msra.mxu2 %v30_v50 }
  0x1b   :  { %142 = vmatpush.msra.mxu1 %v71_v41  ;;  %180 = vmatpush.msra.mxu3 %v78_v51 }
  0x1c   :  { %123 = vmatpush.msra.mxu0 %v20_v44 }
  0x1d   :  { %143 = vmatpush.msra.mxu1 %v68_v45 }
  0x1e   :  { %124 = vmatpush.msra.mxu0 %v17_v48 }
  0x1f   :  { %144 = vmatpush.msra.mxu1 %v65_v49 }
  0x20   :  { %125 = vmatpush.msra.mxu0 %v14_v52 }
  0x21   :  { %145 = vmatpush.msra.mxu1 %v62_v53 }
  0x22   :  { %190 = vmatpush.msrb.mxu0 %v61_v54 }
  0x23   :  { %210 = vmatpush.msrb.mxu1 %v109_v55 }
  0x24   :  { %7 = vsyncpa [#allocation3], 0  ;;  %v55_v62 = vld [vmem:[%s591_s1 + $0x148] sm:$0xff]  ;;  %161 = vmatpush.msra.mxu2 %v27_v56  ;;  %181 = vmatpush.msra.mxu3 %v75_v57  ;;  %v21_v0 = vld [vmem:[%s591_s1 + $0x38] sm:$0xff]  ;;  %s277_s7 = smov [#allocation2]   ;;  %vm232_vm0 = vcmask 105472  }
  0x25   :  { %v103_v63 = vld [vmem:[%s591_s1 + $0x2c8] sm:$0xff]  ;;  %191 = vmatpush.msrb.mxu0 %v58_v58  ;;  %211 = vmatpush.msrb.mxu1 %v106_v59  ;;  %v69_v1 = vld [vmem:[%s591_s1 + $0x1b8] sm:$0xff]  ;;  %v52_v2 = vld [vmem:[%s591_s1 + $0x130] sm:$0xff]  ;;  %s239_s8 = sshll.u32 %s277_s7, 4  ;;  %s240_s8 = int_to_ptr.vmem [resolvable:$true] %s239_s8 }
  0x26   :  { %v100_v3 = vld [vmem:[%s591_s1 + $0x2b0] sm:$0xff]  ;;  %162 = vmatpush.msra.mxu2 %v24_v60  ;;  %182 = vmatpush.msra.mxu3 %v72_v61  ;;  %v18_v4 = vld [vmem:[%s591_s1 + $0x20] sm:$0xff]  ;;  %v49_v6 = vld [vmem:[%s591_s1 + $0x118] sm:$0xff] }
  0x27   :  { %192 = vmatpush.msrb.mxu0 %v55_v62  ;;  %212 = vmatpush.msrb.mxu1 %v103_v63  ;;  %v66_v5 = vld [vmem:[%s591_s1 + $0x1a0] sm:$0xff]  ;;  %v97_v7 = vld [vmem:[%s591_s1 + $0x298] sm:$0xff]  ;;  %v13_v9 = vld [vmem:[%s590_s0 + $0x8] sm:$0xff] }
  0x28   :  { %163 = vmatpush.msra.mxu2 %v21_v0  ;;  %183 = vmatpush.msra.mxu3 %v69_v1  ;;  %v12_v8 = vld [vmem:[%s590_s0] sm:$0xff]  ;;  %v15_v12 = vld [vmem:[%s591_s1 + $0x8] sm:$0xff]  ;;  %v40_v16 = vld [vmem:[%s591_s1 + $0xd0] sm:$0xff] }
  0x29   :  { %193 = vmatpush.msrb.mxu0 %v52_v2  ;;  %213 = vmatpush.msrb.mxu1 %v100_v3  ;;  %v46_v10 = vld [vmem:[%s591_s1 + $0x100] sm:$0xff]  ;;  %v63_v13 = vld [vmem:[%s591_s1 + $0x188] sm:$0xff]  ;;  %v88_v17 = vld [vmem:[%s591_s1 + $0x250] sm:$0xff] }
  0x2a   :  { %v94_v11 = vld [vmem:[%s591_s1 + $0x280] sm:$0xff]  ;;  %164 = vmatpush.msra.mxu2 %v18_v4  ;;  %184 = vmatpush.msra.mxu3 %v66_v5  ;;  %v43_v14 = vld [vmem:[%s591_s1 + $0xe8] sm:$0xff]  ;;  %v37_v18 = vld [vmem:[%s591_s1 + $0xb8] sm:$0xff] }
  0x2b   :  { %194 = vmatpush.msrb.mxu0 %v49_v6  ;;  %214 = vmatpush.msrb.mxu1 %v97_v7  ;;  %v91_v15 = vld [vmem:[%s591_s1 + $0x268] sm:$0xff]  ;;  %v85_v19 = vld [vmem:[%s591_s1 + $0x238] sm:$0xff]  ;;  %v34_v20 = vld [vmem:[%s591_s1 + $0xa0] sm:$0xff] }
  0x2c   :  { %126 = vmatmul.f32.vlgmr.msra.gmra.mxu0 %v12_v8  ;;  %146 = vmatmul.f32.vlgmr.msra.gmra.mxu1 %v13_v9  ;;  %v82_v21 = vld [vmem:[%s591_s1 + $0x220] sm:$0xff]  ;;  %v31_v22 = vld [vmem:[%s591_s1 + $0x88] sm:$0xff]  ;;  %v28_v24 = vld [vmem:[%s591_s1 + $0x70] sm:$0xff] }
  0x2d   :  { %195 = vmatpush.msrb.mxu0 %v46_v10  ;;  %215 = vmatpush.msrb.mxu1 %v94_v11  ;;  %v79_v23 = vld [vmem:[%s591_s1 + $0x208] sm:$0xff]  ;;  %v76_v25 = vld [vmem:[%s591_s1 + $0x1f0] sm:$0xff]  ;;  %v25_v26 = vld [vmem:[%s591_s1 + $0x58] sm:$0xff] }
  0x2e   :  { %165 = vmatpush.msra.mxu2 %v15_v12  ;;  %185 = vmatpush.msra.mxu3 %v63_v13  ;;  %v73_v27 = vld [vmem:[%s591_s1 + $0x1d8] sm:$0xff]  ;;  %v22_v28 = vld [vmem:[%s591_s1 + $0x40] sm:$0xff]  ;;  %v19_v30 = vld [vmem:[%s591_s1 + $0x28] sm:$0xff] }
  0x2f   :  { %196 = vmatpush.msrb.mxu0 %v43_v14  ;;  %216 = vmatpush.msrb.mxu1 %v91_v15  ;;  %v70_v29 = vld [vmem:[%s591_s1 + $0x1c0] sm:$0xff]  ;;  %v67_v31 = vld [vmem:[%s591_s1 + $0x1a8] sm:$0xff]  ;;  %v16_v32 = vld [vmem:[%s591_s1 + $0x10] sm:$0xff] }
  0x30   :  { %166 = vmatmul.f32.vlgmr.msra.gmra.mxu2 %v12_v8  ;;  %186 = vmatmul.f32.vlgmr.msra.gmra.mxu3 %v13_v9  ;;  %v64_v33 = vld [vmem:[%s591_s1 + $0x190] sm:$0xff]  ;;  %s241_s1 = sshll.u32 %s592_s2, 4  ;;  %s242_s1 = int_to_ptr.hbm [resolvable:$true] %s241_s1 }
  0x31   :  { %197 = vmatpush.msrb.mxu0 %v40_v16  ;;  %217 = vmatpush.msrb.mxu1 %v88_v17 }
  0x33   :  { %198 = vmatpush.msrb.mxu0 %v37_v18  ;;  %218 = vmatpush.msrb.mxu1 %v85_v19 }
  0x35   :  { %199 = vmatpush.msrb.mxu0 %v34_v20  ;;  %219 = vmatpush.msrb.mxu1 %v82_v21 }
  0x37   :  { %200 = vmatpush.msrb.mxu0 %v31_v22  ;;  %220 = vmatpush.msrb.mxu1 %v79_v23 }
  0x39   :  { %201 = vmatpush.msrb.mxu0 %v28_v24  ;;  %221 = vmatpush.msrb.mxu1 %v76_v25 }
  0x3b   :  { %202 = vmatpush.msrb.mxu0 %v25_v26  ;;  %222 = vmatpush.msrb.mxu1 %v73_v27 }
  0x3d   :  { %203 = vmatpush.msrb.mxu0 %v22_v28  ;;  %223 = vmatpush.msrb.mxu1 %v70_v29 }
  0x3f   :  { %204 = vmatpush.msrb.mxu0 %v19_v30  ;;  %224 = vmatpush.msrb.mxu1 %v67_v31 }
  0x41   :  { %205 = vmatpush.msrb.mxu0 %v16_v32  ;;  %225 = vmatpush.msrb.mxu1 %v64_v33 }
  0x42   :  { %206 = vmatmul.f32.vlgmr.msrb.gmra.mxu0 %v12_v8  ;;  %226 = vmatmul.f32.vlgmr.msrb.gmra.mxu1 %v13_v9 }
  0xa9   :  { %v127_v34 = vpop.f32.mrf.mxu0  ;;  %v147_v35 = vpop.f32.mrf.mxu1 }
  0xaa   :  { %v148_v36 = vadd.f32 %v147_v35, %v127_v34 }
  0xac   :  { %230 = vst [vmem:[#allocation2] sm:$0xff] %v148_v36 }
  0xb3   :  { %v167_v37 = vpop.f32.mrf.mxu2  ;;  %v187_v38 = vpop.f32.mrf.mxu3 }
  0xb4   :  { %v188_v39 = vadd.f32 %v187_v38, %v167_v37 }
  0xb6   :  { %231 = vst [vmem:[#allocation2 + $0x8] sm:$0xff] %v188_v39 }
  0xbf   :  { %v207_v40 = vpop.f32.mrf.mxu0  ;;  %v227_v41 = vpop.f32.mrf.mxu1 }
  0xc0   :  { %v228_v42 = vadd.f32 %v227_v41, %v207_v40 }
  0xc2   :  { %233 = vst.msk [vmem:[#allocation2 + $0x10] sm:$0xff] %vm232_vm0, %v228_v42 }
  0xc3   :  { %244 = dma.vmem_to_hbm [thread:$0]  %s240_s8, 384, %s242_s1, [#allocation3]  }
  0xc4   :  { %275 = dma.done.wait [#allocation3], 384  }
  0xc5   :  { %276 = vsyncadd [#allocation3], 4294966912 }
  0xc6   :  { %249 = vsyncpa [#allocation3], 1 }

</bundles_post_ra>
